<compile_context>
chip_gen: v7x
topology: tpu7x:2x2x1
jax: 0.10.0
libtpu: 0.0.40
codegen_flags: <defaults>
</compile_context>

<pallas_src>
import functools

import jax
import jax.numpy as jnp
from jax.experimental import pallas as pl
from jax.experimental.pallas import tpu as pltpu


def _round_up(x, m):
    return (x + m - 1) // m * m


def _sconv_kernel(coeff_ref, tmpl_ref, x_ref, o_ref, patches_ref,
                  *, KH, KW, Wp, S, G, Cin_p):
    """Fused bank + conv for one group of G images.

    coeff_ref:   SMEM (T,) f32                        template mixing coefficients
    tmpl_ref:    VMEM (T, KH, Cout_p, KW*Cin_p) f32   bank, column k = dx*Cin_p + ci
    x_ref:       VMEM (G, Cin_p, L) bf16              zero-padded images, rows flattened
    o_ref:       VMEM (G, Cout_p, S) f32              S = Ho*Wp (incl. overscan columns)
    patches_ref: VMEM (2, KW*Cin_p, G*S) bf16         per-dy im2col slab (double-buffered)
    """
    T = tmpl_ref.shape[0]

    # ---- bank: w = sum_t coeff[t] * template[t]  (tiny, VPU, f32) -------------
    # Recomputed every grid step (cheap at this size) so it stays correct under
    # "parallel"/megacore sharding of the batch axis.
    # TODO(synk): for banks larger than a few MiB, precompute w in the wrapper
    # (or a persistent-VMEM prologue) instead of keeping the raw bank resident.
    w = coeff_ref[0] * tmpl_ref[0]
    for t in range(1, T):
        w = w + coeff_ref[t] * tmpl_ref[t]
    w_bf = w.astype(jnp.bfloat16)                      # bf16 MXU operand

    # ---- per-dy im2col + matmul, f32 accumulation across dy --------------------
    # For output flat position q = y*Wp + x of image g, tap (dy, dx, ci) reads
    # x_flat[g, ci, q + dy*Wp + dx]  -> a contiguous lane slice of length S.
    acc = None
    for dy in range(KH):
        slot = dy % 2                                  # double-buffer over dy
        for dx in range(KW):
            s0 = dy * Wp + dx
            d0 = dx * Cin_p
            for g in range(G):
                patches_ref[slot, d0:d0 + Cin_p, g * S:(g + 1) * S] = (
                    x_ref[g, :, s0:s0 + S])
        part = jnp.dot(w_bf[dy], patches_ref[slot],
                       preferred_element_type=jnp.float32)
        acc = part if acc is None else acc + part

    for g in range(G):
        o_ref[g] = acc[:, g * S:(g + 1) * S].astype(o_ref.dtype)


def sconv2d(x_nchw, coefficients, templates, *, stride=1, padding=1):
    """SConv2d forward: F.conv2d(x, sum_t coeff[t] * templates[t], stride, padding).

    x_nchw:       (N, Cin, H, W)
    coefficients: (T,)
    templates:    (T, Cout, Cin, KH, KW)   (OIHW per template)
    returns:      (N, Cout, Ho, Wo)        NCHW, same as F.conv2d
    """
    # TODO(synk): stride > 1 not implemented (module default stride=1 is used).
    assert stride == 1, "only stride=1 supported in this kernel"

    N, Cin, H, W = x_nchw.shape
    T, Cout, Cin2, KH, KW = templates.shape
    assert Cin == Cin2
    out_dtype = x_nchw.dtype

    Hp, Wp = H + 2 * padding, W + 2 * padding
    Ho, Wo = Hp - KH + 1, Wp - KW + 1
    S = Ho * Wp                        # flat output row-length incl. KW-1 overscan cols

    # Sublane-tile channel padding -> full-tile (unmasked) im2col stores.
    Cin_p = _round_up(Cin, 16)         # bf16 sublane tile
    Cout_p = _round_up(Cout, 8)        # f32 output sublane tile
    KWC = KW * Cin_p

    # Lane-batch small images: G images per grid step -> >=512 output lanes.
    G = min(N, -(-512 // S)) if S < 512 else 1
    G = max(G, 1)
    Nb = -(-N // G) * G                # batch padded to a multiple of G

    # Single pad pass: batch pad + channel pad + spatial zero border + enough
    # extra bottom rows that every shifted flat slice stays in bounds.
    extra = -(-(KW - 1) // Wp) if KW > 1 else 0
    L = (Hp + extra) * Wp
    x_pad = jnp.pad(
        x_nchw.astype(jnp.bfloat16),
        ((0, Nb - N), (0, Cin_p - Cin),
         (padding, padding + extra), (padding, padding)),
    )
    x_flat = x_pad.reshape(Nb, Cin_p, L)
    # TODO(synk): fold the zero border / channel pad into the kernel (x in
    # pl.ANY + manual interior DMA) to remove this extra HBM read+write pass.

    # templates -> (T, KH, Cout_p, KW*Cin_p) with column k = dx*Cin_p + ci,
    # matching the im2col row order inside the kernel. Kept f32 (tiny) so the
    # bank combine is full precision; only the combined weight is cast to bf16.
    tmpl = jnp.transpose(templates, (0, 3, 1, 4, 2))   # (T, KH, Cout, KW, Cin)
    tmpl = jnp.pad(tmpl.astype(jnp.float32),
                   ((0, 0), (0, 0), (0, Cout_p - Cout), (0, 0), (0, Cin_p - Cin)))
    tmpl = tmpl.reshape(T, KH, Cout_p, KWC)
    coeff = coefficients.astype(jnp.float32)

    kernel = functools.partial(_sconv_kernel, KH=KH, KW=KW, Wp=Wp, S=S, G=G,
                               Cin_p=Cin_p)

    # Explicit VMEM budget: double-buffered x/out/templates blocks + the per-dy
    # im2col double buffer + f32 accumulator, with 2x headroom (capped at v7x
    # physical 64 MiB; larger shapes need the row-band TODO below).
    bytes_x = G * Cin_p * L * 2
    bytes_o = G * Cout_p * S * 4
    bytes_t = T * KH * Cout_p * KWC * 4
    bytes_patch = 2 * KWC * G * S * 2
    bytes_acc = Cout_p * G * S * 4 + 2 * KH * Cout_p * KWC * 4
    footprint = 2 * (bytes_x + bytes_o + bytes_t) + bytes_patch + bytes_acc
    vmem_limit = int(min(max(2 * footprint + (4 << 20), 32 << 20), 64 << 20))

    cost = pl.CostEstimate(
        flops=2 * Nb * Cout_p * KH * KWC * S + 2 * Nb * T * KH * Cout_p * KWC,
        transcendentals=0,
        bytes_accessed=(Nb * Cin_p * L * 2
                        + T * KH * Cout_p * KWC * 4
                        + Nb * Cout_p * S * 4),
    )

    out_flat = pl.pallas_call(
        kernel,
        out_shape=jax.ShapeDtypeStruct((Nb, Cout_p, S), out_dtype),
        grid=(Nb // G,),
        in_specs=[
            pl.BlockSpec(memory_space=pltpu.MemorySpace.SMEM),            # coefficients
            pl.BlockSpec((T, KH, Cout_p, KWC), lambda b: (0, 0, 0, 0)),   # bank (resident)
            pl.BlockSpec((G, Cin_p, L), lambda b: (b, 0, 0)),             # image group b
        ],
        out_specs=pl.BlockSpec((G, Cout_p, S), lambda b: (b, 0, 0)),
        scratch_shapes=[pltpu.VMEM((2, KWC, G * S), jnp.bfloat16)],
        compiler_params=pltpu.CompilerParams(
            dimension_semantics=("parallel",),
            vmem_limit_bytes=vmem_limit,
        ),
        cost_estimate=cost,
    )(coeff, tmpl, x_flat)

    # Drop batch / channel padding and the KW-1 overscan columns; result is NCHW.
    out = out_flat[:N, :Cout].reshape(N, Cout, Ho, Wp)[:, :, :, :Wo]
    # TODO(synk): for very large H*W add a row-band grid axis (Hb output rows +
    # KH-1-row halo) so per-step blocks stay small on v7x (64 MiB VMEM) and the
    # pipeline gets >=8 steps per TensorCore.
    return out


if __name__ == "__main__":
    key = jax.random.PRNGKey(0)
    k1, k2, k3 = jax.random.split(key, 3)

    N, Cin, H, W = 2, 4, 16, 16
    Cout, KH, KW, T = 8, 3, 3, 4

    x = jax.random.normal(k1, (N, Cin, H, W), dtype=jnp.float32)
    coefficients = jax.random.normal(k2, (T,), dtype=jnp.float32)
    templates = 0.1 * jax.random.normal(
        k3, (T, Cout, Cin, KH, KW), dtype=jnp.float32)

    out = sconv2d(x, coefficients, templates, stride=1, padding=1)
    out = jax.block_until_ready(out)

    # Pure-JAX references (mirror F.conv2d(x, bank(coefficients), stride=1, pad=1)).
    # Bank combined in the same sequential order as the kernel.
    params = coefficients[0] * templates[0]
    for t in range(1, T):
        params = params + coefficients[t] * templates[t]

    ref_f32 = jax.lax.conv_general_dilated(
        x, params, window_strides=(1, 1), padding=((1, 1), (1, 1)),
        dimension_numbers=("NCHW", "OIHW", "NCHW"))

    # bf16-consistent reference (kernel uses bf16 MXU operands, f32 accumulation).
    ref_bf16 = jax.lax.conv_general_dilated(
        x.astype(jnp.bfloat16), params.astype(jnp.bfloat16),
        window_strides=(1, 1), padding=((1, 1), (1, 1)),
        dimension_numbers=("NCHW", "OIHW", "NCHW"),
        preferred_element_type=jnp.float32)

    assert out.shape == ref_f32.shape == (N, Cout, H, W), (out.shape, ref_f32.shape)
    err_tight = float(jnp.max(jnp.abs(out - ref_bf16)))   # same-precision reference
    err_loose = float(jnp.max(jnp.abs(out - ref_f32)))    # bf16 rounding vs pure f32
    assert err_tight < 5e-3, err_tight
    assert err_loose < 2.5e-1, err_loose
    print("KERNEL_OK")
</pallas_src>

<mosaic_0001>
module attributes {stable_mosaic.version = 11 : i64} {
  func.func @_sconv_kernel(%arg0: i32, %arg1: memref<4xf32, #tpu.memory_space<smem>>, %arg2: memref<4x3x8x48xf32, #tpu.memory_space<vmem>>, %arg3: memref<2x16x342xbf16, #tpu.memory_space<vmem>>, %arg4: memref<2x8x288xf32, #tpu.memory_space<vmem>>, %arg5: memref<2x48x576xbf16, #tpu.memory_space<vmem>>) attributes {dimension_semantics = [#tpu.dimension_semantics<parallel>], iteration_bounds = array<i64: 1>, scalar_prefetch = 0 : i64, scratch_operands = 1 : i64, tpu.core_type = #tpu.core_type<tc>, window_params = [{transform_indices = @transform_0, window_bounds = array<i64: 4>}, {pipeline_mode = #tpu.pipeline_mode<synchronous>, transform_indices = @transform_1, window_bounds = array<i64: 4, 3, 8, 48>}, {transform_indices = @transform_2, window_bounds = array<i64: 2, 16, 342>}, {transform_indices = @transform_3, window_bounds = array<i64: 2, 8, 288>}]} {
    %c0 = arith.constant 0 : index
    %0 = memref.load %arg1[%c0] : memref<4xf32, #tpu.memory_space<smem>>
    %c0_0 = arith.constant 0 : index
    %c0_1 = arith.constant 0 : index
    %c0_2 = arith.constant 0 : index
    %c0_3 = arith.constant 0 : index
    %1 = vector.load %arg2[%c0_0, %c0_1, %c0_2, %c0_3] : memref<4x3x8x48xf32, #tpu.memory_space<vmem>>, vector<1x3x8x48xf32>
    %2 = vector.shape_cast %1 : vector<1x3x8x48xf32> to vector<3x8x48xf32>
    %3 = vector.broadcast %0 : f32 to vector<3x8x48xf32>
    %4 = arith.mulf %3, %2 : vector<3x8x48xf32>
    %c1 = arith.constant 1 : index
    %5 = memref.load %arg1[%c1] : memref<4xf32, #tpu.memory_space<smem>>
    %c1_4 = arith.constant 1 : index
    %c0_5 = arith.constant 0 : index
    %c0_6 = arith.constant 0 : index
    %c0_7 = arith.constant 0 : index
    %6 = vector.load %arg2[%c1_4, %c0_5, %c0_6, %c0_7] : memref<4x3x8x48xf32, #tpu.memory_space<vmem>>, vector<1x3x8x48xf32>
    %7 = vector.shape_cast %6 : vector<1x3x8x48xf32> to vector<3x8x48xf32>
    %8 = vector.broadcast %5 : f32 to vector<3x8x48xf32>
    %9 = arith.mulf %8, %7 : vector<3x8x48xf32>
    %10 = arith.addf %4, %9 : vector<3x8x48xf32>
    %c2 = arith.constant 2 : index
    %11 = memref.load %arg1[%c2] : memref<4xf32, #tpu.memory_space<smem>>
    %c2_8 = arith.constant 2 : index
    %c0_9 = arith.constant 0 : index
    %c0_10 = arith.constant 0 : index
    %c0_11 = arith.constant 0 : index
    %12 = vector.load %arg2[%c2_8, %c0_9, %c0_10, %c0_11] : memref<4x3x8x48xf32, #tpu.memory_space<vmem>>, vector<1x3x8x48xf32>
    %13 = vector.shape_cast %12 : vector<1x3x8x48xf32> to vector<3x8x48xf32>
    %14 = vector.broadcast %11 : f32 to vector<3x8x48xf32>
    %15 = arith.mulf %14, %13 : vector<3x8x48xf32>
    %16 = arith.addf %10, %15 : vector<3x8x48xf32>
    %c3 = arith.constant 3 : index
    %17 = memref.load %arg1[%c3] : memref<4xf32, #tpu.memory_space<smem>>
    %c3_12 = arith.constant 3 : index
    %c0_13 = arith.constant 0 : index
    %c0_14 = arith.constant 0 : index
    %c0_15 = arith.constant 0 : index
    %18 = vector.load %arg2[%c3_12, %c0_13, %c0_14, %c0_15] : memref<4x3x8x48xf32, #tpu.memory_space<vmem>>, vector<1x3x8x48xf32>
    %19 = vector.shape_cast %18 : vector<1x3x8x48xf32> to vector<3x8x48xf32>
    %20 = vector.broadcast %17 : f32 to vector<3x8x48xf32>
    %21 = arith.mulf %20, %19 : vector<3x8x48xf32>
    %22 = arith.addf %16, %21 : vector<3x8x48xf32>
    %23 = arith.truncf %22 : vector<3x8x48xf32> to vector<3x8x48xbf16>
    %c0_16 = arith.constant 0 : index
    %c0_17 = arith.constant 0 : index
    %c0_18 = arith.constant 0 : index
    %24 = vector.load %arg3[%c0_16, %c0_17, %c0_18] : memref<2x16x342xbf16, #tpu.memory_space<vmem>>, vector<1x16x288xbf16>
    %25 = vector.shape_cast %24 : vector<1x16x288xbf16> to vector<16x288xbf16>
    %c0_19 = arith.constant 0 : index
    %c0_20 = arith.constant 0 : index
    %c0_21 = arith.constant 0 : index
    %26 = vector.load %arg5[%c0_19, %c0_20, %c0_21] : memref<2x48x576xbf16, #tpu.memory_space<vmem>>, vector<1x16x288xbf16>
    %27 = vector.shape_cast %26 : vector<1x16x288xbf16> to vector<16x288xbf16>
    %28 = vector.shape_cast %25 : vector<16x288xbf16> to vector<1x16x288xbf16>
    tpu.vector_store %arg5[%c0_19, %c0_20, %c0_21], %28 {strides = array<i32>} : memref<2x48x576xbf16, #tpu.memory_space<vmem>>, vector<1x16x288xbf16>,
    %c1_22 = arith.constant 1 : index
    %c0_23 = arith.constant 0 : index
    %c0_24 = arith.constant 0 : index
    %29 = vector.load %arg3[%c1_22, %c0_23, %c0_24] : memref<2x16x342xbf16, #tpu.memory_space<vmem>>, vector<1x16x288xbf16>
    %30 = vector.shape_cast %29 : vector<1x16x288xbf16> to vector<16x288xbf16>
    %c0_25 = arith.constant 0 : index
    %c0_26 = arith.constant 0 : index
    %c288 = arith.constant 288 : index
    %31 = vector.load %arg5[%c0_25, %c0_26, %c288] : memref<2x48x576xbf16, #tpu.memory_space<vmem>>, vector<1x16x288xbf16>
    %32 = vector.shape_cast %31 : vector<1x16x288xbf16> to vector<16x288xbf16>
    %33 = vector.shape_cast %30 : vector<16x288xbf16> to vector<1x16x288xbf16>
    tpu.vector_store %arg5[%c0_25, %c0_26, %c288], %33 {strides = array<i32>} : memref<2x48x576xbf16, #tpu.memory_space<vmem>>, vector<1x16x288xbf16>,
    %c0_27 = arith.constant 0 : index
    %c0_28 = arith.constant 0 : index
    %c1_29 = arith.constant 1 : index
    %34 = vector.load %arg3[%c0_27, %c0_28, %c1_29] : memref<2x16x342xbf16, #tpu.memory_space<vmem>>, vector<1x16x288xbf16>
    %35 = vector.shape_cast %34 : vector<1x16x288xbf16> to vector<16x288xbf16>
    %c0_30 = arith.constant 0 : index
    %c16 = arith.constant 16 : index
    %c0_31 = arith.constant 0 : index
    %36 = vector.load %arg5[%c0_30, %c16, %c0_31] : memref<2x48x576xbf16, #tpu.memory_space<vmem>>, vector<1x16x288xbf16>
    %37 = vector.shape_cast %36 : vector<1x16x288xbf16> to vector<16x288xbf16>
    %38 = vector.shape_cast %35 : vector<16x288xbf16> to vector<1x16x288xbf16>
    tpu.vector_store %arg5[%c0_30, %c16, %c0_31], %38 {strides = array<i32>} : memref<2x48x576xbf16, #tpu.memory_space<vmem>>, vector<1x16x288xbf16>,
    %c1_32 = arith.constant 1 : index
    %c0_33 = arith.constant 0 : index
    %c1_34 = arith.constant 1 : index
    %39 = vector.load %arg3[%c1_32, %c0_33, %c1_34] : memref<2x16x342xbf16, #tpu.memory_space<vmem>>, vector<1x16x288xbf16>
    %40 = vector.shape_cast %39 : vector<1x16x288xbf16> to vector<16x288xbf16>
    %c0_35 = arith.constant 0 : index
    %c16_36 = arith.constant 16 : index
    %c288_37 = arith.constant 288 : index
    %41 = vector.load %arg5[%c0_35, %c16_36, %c288_37] : memref<2x48x576xbf16, #tpu.memory_space<vmem>>, vector<1x16x288xbf16>
    %42 = vector.shape_cast %41 : vector<1x16x288xbf16> to vector<16x288xbf16>
    %43 = vector.shape_cast %40 : vector<16x288xbf16> to vector<1x16x288xbf16>
    tpu.vector_store %arg5[%c0_35, %c16_36, %c288_37], %43 {strides = array<i32>} : memref<2x48x576xbf16, #tpu.memory_space<vmem>>, vector<1x16x288xbf16>,
    %c0_38 = arith.constant 0 : index
    %c0_39 = arith.constant 0 : index
    %c2_40 = arith.constant 2 : index
    %44 = vector.load %arg3[%c0_38, %c0_39, %c2_40] : memref<2x16x342xbf16, #tpu.memory_space<vmem>>, vector<1x16x288xbf16>
    %45 = vector.shape_cast %44 : vector<1x16x288xbf16> to vector<16x288xbf16>
    %c0_41 = arith.constant 0 : index
    %c32 = arith.constant 32 : index
    %c0_42 = arith.constant 0 : index
    %46 = vector.load %arg5[%c0_41, %c32, %c0_42] : memref<2x48x576xbf16, #tpu.memory_space<vmem>>, vector<1x16x288xbf16>
    %47 = vector.shape_cast %46 : vector<1x16x288xbf16> to vector<16x288xbf16>
    %48 = vector.shape_cast %45 : vector<16x288xbf16> to vector<1x16x288xbf16>
    tpu.vector_store %arg5[%c0_41, %c32, %c0_42], %48 {strides = array<i32>} : memref<2x48x576xbf16, #tpu.memory_space<vmem>>, vector<1x16x288xbf16>,
    %c1_43 = arith.constant 1 : index
    %c0_44 = arith.constant 0 : index
    %c2_45 = arith.constant 2 : index
    %49 = vector.load %arg3[%c1_43, %c0_44, %c2_45] : memref<2x16x342xbf16, #tpu.memory_space<vmem>>, vector<1x16x288xbf16>
    %50 = vector.shape_cast %49 : vector<1x16x288xbf16> to vector<16x288xbf16>
    %c0_46 = arith.constant 0 : index
    %c32_47 = arith.constant 32 : index
    %c288_48 = arith.constant 288 : index
    %51 = vector.load %arg5[%c0_46, %c32_47, %c288_48] : memref<2x48x576xbf16, #tpu.memory_space<vmem>>, vector<1x16x288xbf16>
    %52 = vector.shape_cast %51 : vector<1x16x288xbf16> to vector<16x288xbf16>
    %53 = vector.shape_cast %50 : vector<16x288xbf16> to vector<1x16x288xbf16>
    tpu.vector_store %arg5[%c0_46, %c32_47, %c288_48], %53 {strides = array<i32>} : memref<2x48x576xbf16, #tpu.memory_space<vmem>>, vector<1x16x288xbf16>,
    %54 = vector.extract_strided_slice %23 {offsets = [0, 0, 0], sizes = [1, 8, 48], strides = [1, 1, 1]} : vector<3x8x48xbf16> to vector<1x8x48xbf16>
    %55 = vector.shape_cast %54 : vector<1x8x48xbf16> to vector<8x48xbf16>
    %c0_49 = arith.constant 0 : index
    %c0_50 = arith.constant 0 : index
    %c0_51 = arith.constant 0 : index
    %56 = vector.load %arg5[%c0_49, %c0_50, %c0_51] : memref<2x48x576xbf16, #tpu.memory_space<vmem>>, vector<1x48x576xbf16>
    %57 = vector.shape_cast %56 : vector<1x48x576xbf16> to vector<48x576xbf16>
    %cst = arith.constant dense<0.000000e+00> : vector<8x576xf32>
    %58 = tpu.matmul %55, %57, %cst {dimension_numbers = #tpu.dot_dimension_numbers<[1], [0], [0], [1], [0, 0, 1, 1], [], []>} : vector<8x48xbf16>, vector<48x576xbf16>, vector<8x576xf32> -> vector<8x576xf32>
    %c0_52 = arith.constant 0 : index
    %c0_53 = arith.constant 0 : index
    %c18 = arith.constant 18 : index
    %59 = vector.load %arg3[%c0_52, %c0_53, %c18] : memref<2x16x342xbf16, #tpu.memory_space<vmem>>, vector<1x16x288xbf16>
    %60 = vector.shape_cast %59 : vector<1x16x288xbf16> to vector<16x288xbf16>
    %c1_54 = arith.constant 1 : index
    %c0_55 = arith.constant 0 : index
    %c0_56 = arith.constant 0 : index
    %61 = vector.load %arg5[%c1_54, %c0_55, %c0_56] : memref<2x48x576xbf16, #tpu.memory_space<vmem>>, vector<1x16x288xbf16>
    %62 = vector.shape_cast %61 : vector<1x16x288xbf16> to vector<16x288xbf16>
    %63 = vector.shape_cast %60 : vector<16x288xbf16> to vector<1x16x288xbf16>
    tpu.vector_store %arg5[%c1_54, %c0_55, %c0_56], %63 {strides = array<i32>} : memref<2x48x576xbf16, #tpu.memory_space<vmem>>, vector<1x16x288xbf16>,
    %c1_57 = arith.constant 1 : index
    %c0_58 = arith.constant 0 : index
    %c18_59 = arith.constant 18 : index
    %64 = vector.load %arg3[%c1_57, %c0_58, %c18_59] : memref<2x16x342xbf16, #tpu.memory_space<vmem>>, vector<1x16x288xbf16>
    %65 = vector.shape_cast %64 : vector<1x16x288xbf16> to vector<16x288xbf16>
    %c1_60 = arith.constant 1 : index
    %c0_61 = arith.constant 0 : index
    %c288_62 = arith.constant 288 : index
    %66 = vector.load %arg5[%c1_60, %c0_61, %c288_62] : memref<2x48x576xbf16, #tpu.memory_space<vmem>>, vector<1x16x288xbf16>
    %67 = vector.shape_cast %66 : vector<1x16x288xbf16> to vector<16x288xbf16>
    %68 = vector.shape_cast %65 : vector<16x288xbf16> to vector<1x16x288xbf16>
    tpu.vector_store %arg5[%c1_60, %c0_61, %c288_62], %68 {strides = array<i32>} : memref<2x48x576xbf16, #tpu.memory_space<vmem>>, vector<1x16x288xbf16>,
    %c0_63 = arith.constant 0 : index
    %c0_64 = arith.constant 0 : index
    %c19 = arith.constant 19 : index
    %69 = vector.load %arg3[%c0_63, %c0_64, %c19] : memref<2x16x342xbf16, #tpu.memory_space<vmem>>, vector<1x16x288xbf16>
    %70 = vector.shape_cast %69 : vector<1x16x288xbf16> to vector<16x288xbf16>
    %c1_65 = arith.constant 1 : index
    %c16_66 = arith.constant 16 : index
    %c0_67 = arith.constant 0 : index
    %71 = vector.load %arg5[%c1_65, %c16_66, %c0_67] : memref<2x48x576xbf16, #tpu.memory_space<vmem>>, vector<1x16x288xbf16>
    %72 = vector.shape_cast %71 : vector<1x16x288xbf16> to vector<16x288xbf16>
    %73 = vector.shape_cast %70 : vector<16x288xbf16> to vector<1x16x288xbf16>
    tpu.vector_store %arg5[%c1_65, %c16_66, %c0_67], %73 {strides = array<i32>} : memref<2x48x576xbf16, #tpu.memory_space<vmem>>, vector<1x16x288xbf16>,
    %c1_68 = arith.constant 1 : index
    %c0_69 = arith.constant 0 : index
    %c19_70 = arith.constant 19 : index
    %74 = vector.load %arg3[%c1_68, %c0_69, %c19_70] : memref<2x16x342xbf16, #tpu.memory_space<vmem>>, vector<1x16x288xbf16>
    %75 = vector.shape_cast %74 : vector<1x16x288xbf16> to vector<16x288xbf16>
    %c1_71 = arith.constant 1 : index
    %c16_72 = arith.constant 16 : index
    %c288_73 = arith.constant 288 : index
    %76 = vector.load %arg5[%c1_71, %c16_72, %c288_73] : memref<2x48x576xbf16, #tpu.memory_space<vmem>>, vector<1x16x288xbf16>
    %77 = vector.shape_cast %76 : vector<1x16x288xbf16> to vector<16x288xbf16>
    %78 = vector.shape_cast %75 : vector<16x288xbf16> to vector<1x16x288xbf16>
    tpu.vector_store %arg5[%c1_71, %c16_72, %c288_73], %78 {strides = array<i32>} : memref<2x48x576xbf16, #tpu.memory_space<vmem>>, vector<1x16x288xbf16>,
    %c0_74 = arith.constant 0 : index
    %c0_75 = arith.constant 0 : index
    %c20 = arith.constant 20 : index
    %79 = vector.load %arg3[%c0_74, %c0_75, %c20] : memref<2x16x342xbf16, #tpu.memory_space<vmem>>, vector<1x16x288xbf16>
    %80 = vector.shape_cast %79 : vector<1x16x288xbf16> to vector<16x288xbf16>
    %c1_76 = arith.constant 1 : index
    %c32_77 = arith.constant 32 : index
    %c0_78 = arith.constant 0 : index
    %81 = vector.load %arg5[%c1_76, %c32_77, %c0_78] : memref<2x48x576xbf16, #tpu.memory_space<vmem>>, vector<1x16x288xbf16>
    %82 = vector.shape_cast %81 : vector<1x16x288xbf16> to vector<16x288xbf16>
    %83 = vector.shape_cast %80 : vector<16x288xbf16> to vector<1x16x288xbf16>
    tpu.vector_store %arg5[%c1_76, %c32_77, %c0_78], %83 {strides = array<i32>} : memref<2x48x576xbf16, #tpu.memory_space<vmem>>, vector<1x16x288xbf16>,
    %c1_79 = arith.constant 1 : index
    %c0_80 = arith.constant 0 : index
    %c20_81 = arith.constant 20 : index
    %84 = vector.load %arg3[%c1_79, %c0_80, %c20_81] : memref<2x16x342xbf16, #tpu.memory_space<vmem>>, vector<1x16x288xbf16>
    %85 = vector.shape_cast %84 : vector<1x16x288xbf16> to vector<16x288xbf16>
    %c1_82 = arith.constant 1 : index
    %c32_83 = arith.constant 32 : index
    %c288_84 = arith.constant 288 : index
    %86 = vector.load %arg5[%c1_82, %c32_83, %c288_84] : memref<2x48x576xbf16, #tpu.memory_space<vmem>>, vector<1x16x288xbf16>
    %87 = vector.shape_cast %86 : vector<1x16x288xbf16> to vector<16x288xbf16>
    %88 = vector.shape_cast %85 : vector<16x288xbf16> to vector<1x16x288xbf16>
    tpu.vector_store %arg5[%c1_82, %c32_83, %c288_84], %88 {strides = array<i32>} : memref<2x48x576xbf16, #tpu.memory_space<vmem>>, vector<1x16x288xbf16>,
    %89 = vector.extract_strided_slice %23 {offsets = [1, 0, 0], sizes = [1, 8, 48], strides = [1, 1, 1]} : vector<3x8x48xbf16> to vector<1x8x48xbf16>
    %90 = vector.shape_cast %89 : vector<1x8x48xbf16> to vector<8x48xbf16>
    %c1_85 = arith.constant 1 : index
    %c0_86 = arith.constant 0 : index
    %c0_87 = arith.constant 0 : index
    %91 = vector.load %arg5[%c1_85, %c0_86, %c0_87] : memref<2x48x576xbf16, #tpu.memory_space<vmem>>, vector<1x48x576xbf16>
    %92 = vector.shape_cast %91 : vector<1x48x576xbf16> to vector<48x576xbf16>
    %cst_88 = arith.constant dense<0.000000e+00> : vector<8x576xf32>
    %93 = tpu.matmul %90, %92, %cst_88 {dimension_numbers = #tpu.dot_dimension_numbers<[1], [0], [0], [1], [0, 0, 1, 1], [], []>} : vector<8x48xbf16>, vector<48x576xbf16>, vector<8x576xf32> -> vector<8x576xf32>
    %94 = arith.addf %58, %93 : vector<8x576xf32>
    %c0_89 = arith.constant 0 : index
    %c0_90 = arith.constant 0 : index
    %c36 = arith.constant 36 : index
    %95 = vector.load %arg3[%c0_89, %c0_90, %c36] : memref<2x16x342xbf16, #tpu.memory_space<vmem>>, vector<1x16x288xbf16>
    %96 = vector.shape_cast %95 : vector<1x16x288xbf16> to vector<16x288xbf16>
    %c0_91 = arith.constant 0 : index
    %c0_92 = arith.constant 0 : index
    %c0_93 = arith.constant 0 : index
    %97 = vector.load %arg5[%c0_91, %c0_92, %c0_93] : memref<2x48x576xbf16, #tpu.memory_space<vmem>>, vector<1x16x288xbf16>
    %98 = vector.shape_cast %97 : vector<1x16x288xbf16> to vector<16x288xbf16>
    %99 = vector.shape_cast %96 : vector<16x288xbf16> to vector<1x16x288xbf16>
    tpu.vector_store %arg5[%c0_91, %c0_92, %c0_93], %99 {strides = array<i32>} : memref<2x48x576xbf16, #tpu.memory_space<vmem>>, vector<1x16x288xbf16>,
    %c1_94 = arith.constant 1 : index
    %c0_95 = arith.constant 0 : index
    %c36_96 = arith.constant 36 : index
    %100 = vector.load %arg3[%c1_94, %c0_95, %c36_96] : memref<2x16x342xbf16, #tpu.memory_space<vmem>>, vector<1x16x288xbf16>
    %101 = vector.shape_cast %100 : vector<1x16x288xbf16> to vector<16x288xbf16>
    %c0_97 = arith.constant 0 : index
    %c0_98 = arith.constant 0 : index
    %c288_99 = arith.constant 288 : index
    %102 = vector.load %arg5[%c0_97, %c0_98, %c288_99] : memref<2x48x576xbf16, #tpu.memory_space<vmem>>, vector<1x16x288xbf16>
    %103 = vector.shape_cast %102 : vector<1x16x288xbf16> to vector<16x288xbf16>
    %104 = vector.shape_cast %101 : vector<16x288xbf16> to vector<1x16x288xbf16>
    tpu.vector_store %arg5[%c0_97, %c0_98, %c288_99], %104 {strides = array<i32>} : memref<2x48x576xbf16, #tpu.memory_space<vmem>>, vector<1x16x288xbf16>,
    %c0_100 = arith.constant 0 : index
    %c0_101 = arith.constant 0 : index
    %c37 = arith.constant 37 : index
    %105 = vector.load %arg3[%c0_100, %c0_101, %c37] : memref<2x16x342xbf16, #tpu.memory_space<vmem>>, vector<1x16x288xbf16>
    %106 = vector.shape_cast %105 : vector<1x16x288xbf16> to vector<16x288xbf16>
    %c0_102 = arith.constant 0 : index
    %c16_103 = arith.constant 16 : index
    %c0_104 = arith.constant 0 : index
    %107 = vector.load %arg5[%c0_102, %c16_103, %c0_104] : memref<2x48x576xbf16, #tpu.memory_space<vmem>>, vector<1x16x288xbf16>
    %108 = vector.shape_cast %107 : vector<1x16x288xbf16> to vector<16x288xbf16>
    %109 = vector.shape_cast %106 : vector<16x288xbf16> to vector<1x16x288xbf16>
    tpu.vector_store %arg5[%c0_102, %c16_103, %c0_104], %109 {strides = array<i32>} : memref<2x48x576xbf16, #tpu.memory_space<vmem>>, vector<1x16x288xbf16>,
    %c1_105 = arith.constant 1 : index
    %c0_106 = arith.constant 0 : index
    %c37_107 = arith.constant 37 : index
    %110 = vector.load %arg3[%c1_105, %c0_106, %c37_107] : memref<2x16x342xbf16, #tpu.memory_space<vmem>>, vector<1x16x288xbf16>
    %111 = vector.shape_cast %110 : vector<1x16x288xbf16> to vector<16x288xbf16>
    %c0_108 = arith.constant 0 : index
    %c16_109 = arith.constant 16 : index
    %c288_110 = arith.constant 288 : index
    %112 = vector.load %arg5[%c0_108, %c16_109, %c288_110] : memref<2x48x576xbf16, #tpu.memory_space<vmem>>, vector<1x16x288xbf16>
    %113 = vector.shape_cast %112 : vector<1x16x288xbf16> to vector<16x288xbf16>
    %114 = vector.shape_cast %111 : vector<16x288xbf16> to vector<1x16x288xbf16>
    tpu.vector_store %arg5[%c0_108, %c16_109, %c288_110], %114 {strides = array<i32>} : memref<2x48x576xbf16, #tpu.memory_space<vmem>>, vector<1x16x288xbf16>,
    %c0_111 = arith.constant 0 : index
    %c0_112 = arith.constant 0 : index
    %c38 = arith.constant 38 : index
    %115 = vector.load %arg3[%c0_111, %c0_112, %c38] : memref<2x16x342xbf16, #tpu.memory_space<vmem>>, vector<1x16x288xbf16>
    %116 = vector.shape_cast %115 : vector<1x16x288xbf16> to vector<16x288xbf16>
    %c0_113 = arith.constant 0 : index
    %c32_114 = arith.constant 32 : index
    %c0_115 = arith.constant 0 : index
    %117 = vector.load %arg5[%c0_113, %c32_114, %c0_115] : memref<2x48x576xbf16, #tpu.memory_space<vmem>>, vector<1x16x288xbf16>
    %118 = vector.shape_cast %117 : vector<1x16x288xbf16> to vector<16x288xbf16>
    %119 = vector.shape_cast %116 : vector<16x288xbf16> to vector<1x16x288xbf16>
    tpu.vector_store %arg5[%c0_113, %c32_114, %c0_115], %119 {strides = array<i32>} : memref<2x48x576xbf16, #tpu.memory_space<vmem>>, vector<1x16x288xbf16>,
    %c1_116 = arith.constant 1 : index
    %c0_117 = arith.constant 0 : index
    %c38_118 = arith.constant 38 : index
    %120 = vector.load %arg3[%c1_116, %c0_117, %c38_118] : memref<2x16x342xbf16, #tpu.memory_space<vmem>>, vector<1x16x288xbf16>
    %121 = vector.shape_cast %120 : vector<1x16x288xbf16> to vector<16x288xbf16>
    %c0_119 = arith.constant 0 : index
    %c32_120 = arith.constant 32 : index
    %c288_121 = arith.constant 288 : index
    %122 = vector.load %arg5[%c0_119, %c32_120, %c288_121] : memref<2x48x576xbf16, #tpu.memory_space<vmem>>, vector<1x16x288xbf16>
    %123 = vector.shape_cast %122 : vector<1x16x288xbf16> to vector<16x288xbf16>
    %124 = vector.shape_cast %121 : vector<16x288xbf16> to vector<1x16x288xbf16>
    tpu.vector_store %arg5[%c0_119, %c32_120, %c288_121], %124 {strides = array<i32>} : memref<2x48x576xbf16, #tpu.memory_space<vmem>>, vector<1x16x288xbf16>,
    %125 = vector.extract_strided_slice %23 {offsets = [2, 0, 0], sizes = [1, 8, 48], strides = [1, 1, 1]} : vector<3x8x48xbf16> to vector<1x8x48xbf16>
    %126 = vector.shape_cast %125 : vector<1x8x48xbf16> to vector<8x48xbf16>
    %c0_122 = arith.constant 0 : index
    %c0_123 = arith.constant 0 : index
    %c0_124 = arith.constant 0 : index
    %127 = vector.load %arg5[%c0_122, %c0_123, %c0_124] : memref<2x48x576xbf16, #tpu.memory_space<vmem>>, vector<1x48x576xbf16>
    %128 = vector.shape_cast %127 : vector<1x48x576xbf16> to vector<48x576xbf16>
    %cst_125 = arith.constant dense<0.000000e+00> : vector<8x576xf32>
    %129 = tpu.matmul %126, %128, %cst_125 {dimension_numbers = #tpu.dot_dimension_numbers<[1], [0], [0], [1], [0, 0, 1, 1], [], []>} : vector<8x48xbf16>, vector<48x576xbf16>, vector<8x576xf32> -> vector<8x576xf32>
    %130 = arith.addf %94, %129 : vector<8x576xf32>
    %131 = vector.extract_strided_slice %130 {offsets = [0, 0], sizes = [8, 288], strides = [1, 1]} : vector<8x576xf32> to vector<8x288xf32>
    %c0_126 = arith.constant 0 : index
    %c0_127 = arith.constant 0 : index
    %c0_128 = arith.constant 0 : index
    %132 = vector.load %arg4[%c0_126, %c0_127, %c0_128] : memref<2x8x288xf32, #tpu.memory_space<vmem>>, vector<1x8x288xf32>
    %133 = vector.shape_cast %132 : vector<1x8x288xf32> to vector<8x288xf32>
    %134 = vector.shape_cast %131 : vector<8x288xf32> to vector<1x8x288xf32>
    tpu.vector_store %arg4[%c0_126, %c0_127, %c0_128], %134 {strides = array<i32>} : memref<2x8x288xf32, #tpu.memory_space<vmem>>, vector<1x8x288xf32>,
    %135 = vector.extract_strided_slice %130 {offsets = [0, 288], sizes = [8, 288], strides = [1, 1]} : vector<8x576xf32> to vector<8x288xf32>
    %c1_129 = arith.constant 1 : index
    %c0_130 = arith.constant 0 : index
    %c0_131 = arith.constant 0 : index
    %136 = vector.load %arg4[%c1_129, %c0_130, %c0_131] : memref<2x8x288xf32, #tpu.memory_space<vmem>>, vector<1x8x288xf32>
    %137 = vector.shape_cast %136 : vector<1x8x288xf32> to vector<8x288xf32>
    %138 = vector.shape_cast %135 : vector<8x288xf32> to vector<1x8x288xf32>
    tpu.vector_store %arg4[%c1_129, %c0_130, %c0_131], %138 {strides = array<i32>} : memref<2x8x288xf32, #tpu.memory_space<vmem>>, vector<1x8x288xf32>,
    return
  }
  func.func @transform_0(%arg0: i32) -> i32 {
    %c0_i32 = arith.constant 0 : i32
    %c0_i32_0 = arith.constant 0 : i32
    return %c0_i32 : i32
  }
  func.func @transform_1(%arg0: i32) -> (i32, i32, i32, i32) {
    %c0_i32 = arith.constant 0 : i32
    %c0_i32_0 = arith.constant 0 : i32
    %c0_i32_1 = arith.constant 0 : i32
    %c0_i32_2 = arith.constant 0 : i32
    %c0_i32_3 = arith.constant 0 : i32
    return %c0_i32, %c0_i32_0, %c0_i32_1, %c0_i32_2 : i32, i32, i32, i32
  }
  func.func @transform_2(%arg0: i32) -> (i32, i32, i32) {
    %c0_i32 = arith.constant 0 : i32
    %c0_i32_0 = arith.constant 0 : i32
    %c0_i32_1 = arith.constant 0 : i32
    return %arg0, %c0_i32, %c0_i32_0 : i32, i32, i32
  }
  func.func @transform_3(%arg0: i32) -> (i32, i32, i32) {
    %c0_i32 = arith.constant 0 : i32
    %c0_i32_0 = arith.constant 0 : i32
    %c0_i32_1 = arith.constant 0 : i32
    return %arg0, %c0_i32, %c0_i32_0 : i32, i32, i32
  }
}

</mosaic_0001>

<bundles_post_ra>
// kernel: tpu_custom_call.1
= control target key start
LH: loop header
LB: loop body
LE: loop exit
PB: predicated region body
PF: predicated region fallthrough
CT: control target
= control target key end

     0   :  { %8 = vsyncpa [#allocation6], 0  ;;  %s1669_s0 = inlined_call_operand.hbm [shape: f32[4], index: 0, kind: input, shape index: {}]   ;;  %s1670_s1 = inlined_call_operand.hbm [shape: f32[4,3,8,48], index: 1, kind: input, shape index: {}]   ;;  %s1671_s2 = inlined_call_operand.hbm [shape: bf16[2,16,342], index: 2, kind: input, shape index: {}]   ;;  %s1672_s3 = inlined_call_operand.hbm [shape: f32[2,8,288], index: 3, kind: output, shape index: {}]  }
   0x1   :  { %9 = vsyncpa [#allocation4], 0 }
   0x2   :  { %10 = vsyncpa [#allocation9], 0 }
   0x3   :  { %11 = vsyncpa [#allocation5], 0  ;;  %s1325_s14 = scalar_lea.hbm %s1669_s0, 16 }
   0x4   :  { %p1326_p0 = scmp.ne.s32.totalorder %s1669_s0, %s1325_s14  ;;  %p1329_p1 = scmp.lt.u32.totalorder %s1325_s14, %s1669_s0 }
   0x6   :  { %p1331_p2 = pnand %p1329_p1, %p1326_p0 }
   0x8   :  { %1334 = shalt.err (!%p1331_p2)
}
   0x9   :  { %s1409_s19 = smov [#allocation3]   ;;  %s1410_s22 = smov [#allocation7]  }
   0xa   :  { %19 = dma.hbm_to_smem %s1669_s0, 16, %s1409_s19, [#allocation6]  }
   0xb   :  { %s25_s23 = sshll.u32 %s1410_s22, 4  ;;  %s1335_s26 = scalar_lea.hbm %s1670_s1, 1536  ;;  %s26_s23 = int_to_ptr.vmem [resolvable:$true] %s25_s23 }
   0xc   :  { %p1336_p3 = scmp.ne.s32.totalorder %s1670_s1, %s1335_s26  ;;  %p1339_p4 = scmp.lt.u32.totalorder %s1335_s26, %s1670_s1 }
   0xe   :  { %p1341_p5 = pnand %p1339_p4, %p1336_p3 }
  0x10   :  { %1344 = shalt.err (!%p1341_p5)
}
  0x11   :  { %s1345_s4 = scalar_lea.vmem %s26_s23, 1536  ;;  %p1350_p7 = scmp.lt.s32.totalorder %s26_s23, %s26_s23 }
  0x12   :  { %p1346_p6 = scmp.ne.s32.totalorder %s26_s23, %s1345_s4  ;;  %p1351_p8 = scmp.lt.s32.totalorder %s1345_s4, %s1345_s4 }
  0x14   :  { %p1352_p9 = por %p1351_p8, %p1350_p7 }
  0x16   :  { %p1353_p10 = pnand %p1352_p9, %p1346_p6 }
  0x18   :  { %1356 = shalt.err (!%p1353_p10)
}
  0x19   :  { %s1411_s0 = smov 128   ;;  %s1412_s5 = smov 8  }
  0x1a   :  { %31 = dma.hbm_to_vmem [thread:$0]  %s1670_s1, 1536, %s26_s23, [#allocation4], %s1411_s0, %s1411_s0, %s1412_s5  }
  0x1b   :  { %s1413_s8 = smov [#allocation8]   ;;  %s1357_s12 = scalar_lea.hbm %s1671_s2, 768 }
  0x1c   :  { %s37_s9 = sshll.u32 %s1413_s8, 4  ;;  %p1358_p11 = scmp.ne.s32.totalorder %s1671_s2, %s1357_s12  ;;  %s38_s9 = int_to_ptr.vmem [resolvable:$true] %s37_s9 }
  0x1d   :  { %p1361_p12 = scmp.lt.u32.totalorder %s1357_s12, %s1671_s2 }
  0x1f   :  { %p1363_p13 = pnand %p1361_p12, %p1358_p11 }
  0x21   :  { %1366 = shalt.err (!%p1363_p13)
}
  0x22   :  { %s1367_s17 = scalar_lea.vmem %s38_s9, 768  ;;  %p1372_p1 = scmp.lt.s32.totalorder %s38_s9, %s38_s9 }
  0x23   :  { %p1368_p0 = scmp.ne.s32.totalorder %s38_s9, %s1367_s17  ;;  %p1373_p2 = scmp.lt.s32.totalorder %s1367_s17, %s1367_s17 }
  0x25   :  { %p1374_p3 = por %p1373_p2, %p1372_p1 }
  0x27   :  { %p1375_p4 = pnand %p1374_p3, %p1368_p0 }
  0x29   :  { %1378 = shalt.err (!%p1375_p4)
}
  0x2a   :  { %s1414_s1 = smov 192   ;;  %s1415_s18 = smov 12  }
  0x2b   :  { %43 = dma.hbm_to_vmem [thread:$0]  %s1671_s2, 768, %s38_s9, [#allocation9], %s1414_s1, %s1414_s1, %s1415_s18  }
  0x2c   :  { %1401 = dma.done.wait [#allocation6], 16  }
  0x2d   :  { %1402 = vsyncadd [#allocation6], 4294967280 }
  0x2e   :  { %1403 = dma.done.wait [#allocation4], 1536  }
  0x2f   :  { %1404 = vsyncadd [#allocation4], 4294965760 }
  0x30   :  { %1405 = dma.done.wait [#allocation9], 768  }
  0x31   :  { %1406 = vsyncadd [#allocation9], 4294966528 }
  0x32   :  { %53 = sfence }
  0x33   :  { %v1496_v0 = vld [vmem:[#allocation8 + $0x1c] ss:$12 sps:$4 sm:$0xff]   ;;  %s1416_s21 = smov 13   ;;  %s1417_s22 = smov 14   ;;  %v1304_v1 = vld [vmem:[#allocation8 + $0x20] ss:$12 sps:$4 sm:$0xff]  }
  0x34   :  { %420 = vrot.lane.b32.xlu1 %v1496_v0, %s1416_s21  ;;  %356 = vrot.lane.b32.xlu0 %v1496_v0, %s1417_s22  ;;  %v1305_v2 = vld [vmem:[#allocation8 + $0x20] ss:$12 sps:$4 sm:$0xff]   ;;  %v1307_v4 = vld [vmem:[#allocation8 + $0x8] ss:$12 sps:$4 sm:$0xff]   ;;  %v1507_v5 = vld [vmem:[#allocation8 + $0x4] ss:$12 sps:$4 sm:$0xff]  }
  0x35   :  { %v1306_v3 = vld [vmem:[#allocation8 + $0x20] ss:$12 sps:$4 sm:$0xff]   ;;  %s1418_s2 = smov 110   ;;  %s1419_s23 = smov 109   ;;  %v1311_v7 = vld [vmem:[#allocation8 + $0x8] ss:$12 sps:$4 sm:$0xff]  }
  0x36   :  { %v1510_v6 = vld [vmem:[#allocation8] ss:$12 sps:$4 sm:$0xff]   ;;  %s1420_s24 = smov 127   ;;  %v1312_v8 = vld [vmem:[#allocation8 + $0x8] ss:$12 sps:$4 sm:$0xff]   ;;  %v1421_v9 = vmov 0.0  }
  0x37   :  { %1219 = vmatprep.subr.bf16.mxu0 %v1421_v9  ;;  %vm1422_vm0 = vmmov 0   ;;  %s1423_s25 = smov 108   ;;  %v1313_v10 = vld [vmem:[#allocation8 + $0x8] ss:$12 sps:$4 sm:$0xff]   ;;  %s1424_s26 = smov 126   ;;  %v1425_v12 = vmov 0  }
  0x38   :  { %422 = vrot.lane.b32.xlu1 %v1304_v1, %s1416_s21  ;;  %358 = vrot.lane.b32.xlu0 %v1305_v2, %s1417_s22  ;;  %v1314_v11 = vld [vmem:[#allocation8 + $0x8] ss:$12 sps:$4 sm:$0xff]   ;;  %v1303_v13 = vld [vmem:[#allocation8 + $0x18] ss:$12 sps:$4 sm:$0xff]   ;;  %v1315_v14 = vld [vmem:[#allocation8 + $0x20] ss:$12 sps:$4 sm:$0xff]  }
  0x39   :  { %1225 = vmatprep.mubr.msk.bf16.mxu0 %vm1422_vm0, %v1421_v9  ;;  %548 = vmatprep.mubr.bf16.mxu1 %v1425_v12  ;;  %s1426_s27 = smov 32   ;;  %v1324_v15 = vld [vmem:[#allocation8 + $0x8] ss:$12 sps:$4 sm:$0xff]   ;;  %vm124_vm1 = vcmask 261120   ;;  %s1427_s28 = smov 31   ;;  %vm424_vm2 = vcmask 105472  }
  0x3a   :  { %125 = vst.msk [vmem:[#allocation2 + $0x10] sm:$0xff] %vm124_vm1, %v1324_v15  ;;  %v1316_v16 = vld [vmem:[#allocation8 + $0x20] ss:$12 sps:$4 sm:$0xff]   ;;  %s1428_s29 = smov 30   ;;  %s1429_s30 = smov 92   ;;  %vm360_vm3 = vcmask 113664  }
  0x3b   :  { %v1317_v17 = vld [vmem:[#allocation8 + $0x20] ss:$12 sps:$4 sm:$0xff]   ;;  %v1318_v18 = vld [vmem:[#allocation8 + $0x8] ss:$12 sps:$4 sm:$0xff]   ;;  %s1430_s4 = smov 91   ;;  %s1431_s0 = smov 90  }
  0x3c   :  { %486 = vrot.lane.b32.xlu1 %v1306_v3, %s1415_s18  ;;  %484 = vrot.lane.b32.xlu0 %v1496_v0, %s1415_s18  ;;  %v1319_v19 = vld [vmem:[#allocation8 + $0x8] ss:$12 sps:$4 sm:$0xff]   ;;  %v1321_v21 = vld [vmem:[#allocation8 + $0x20] ss:$12 sps:$4 sm:$0xff]   ;;  %s1432_s5 = smov 124   ;;  %s1433_s6 = smov 123  }
  0x3d   :  { %v1320_v20 = vld [vmem:[#allocation8 + $0x8] ss:$12 sps:$4 sm:$0xff]   ;;  %v1322_v22 = vld [vmem:[#allocation8 + $0x20] ss:$12 sps:$4 sm:$0xff]   ;;  %s1434_s7 = smov 122   ;;  %s55_s8 = sld [smem:[#allocation3]] }
  0x3e   :  { %v1323_v23 = vld [vmem:[#allocation8 + $0x20] ss:$12 sps:$4 sm:$0xff]   ;;  %s1141_s9 = sld [smem:[#allocation3 + $0x1]]  ;;  %s1142_s10 = sld [smem:[#allocation3 + $0x2]]  ;;  %vm159_vm4 = vcmask 523264   ;;  %vm488_vm5 = vcmask 97280  }
  0x3f   :  { %v57_v26 = vld [vmem:[#allocation7 + $0x8] sm:$0xff]  ;;  %v66_v28 = vld [vmem:[#allocation7 + $0x20] sm:$0xff]  ;;  %s1143_s11 = sld [smem:[#allocation3 + $0x3]]  ;;  %v78_v36 = vld [vmem:[#allocation7 + $0x38] sm:$0xff]  ;;  %vm327_vm6 = vcmask 900096   ;;  %vm392_vm7 = vcmask 891904  }
  0x40   :  { %325 = vrot.lane.b32.xlu1 %v1307_v4, %s1418_s2  ;;  %323 = vrot.lane.b32.xlu0 %v1507_v5, %s1418_s2  ;;  %v90_v43 = vld [vmem:[#allocation7 + $0x50] sm:$0xff]  ;;  %vm184_vm8 = vcmask 1039360   ;;  %vm512_vm9 = vcmask 392192   ;;  %v56_v61 = vld [vmem:[#allocation7] sm:$0xff]  ;;  %v65_v62 = vld [vmem:[#allocation7 + $0x18] sm:$0xff]  ;;  %vm456_vm10 = vcmask 883712  }
  0x41   :  { %vm248_vm11 = vcmask 1031168   ;;  %vm156_vm12 = vcmask 1047808   ;;  %vm216_vm13 = vcmask 252928   ;;  %vm280_vm14 = vcmask 244736   ;;  %s1435_s12 = smov 96   ;;  %s1436_s13 = smov [#allocation10]  }
  0x42   :  { %vm786_vm15 = vcmask 752640   ;;  %s1127_s14 = sshll.u32 %s1436_s13, 4  ;;  %s1128_s14 = int_to_ptr.vmem [resolvable:$true] %s1127_s14 }
  0x43   :  { %v1545_v27 = vstv %s55_s8  ;;  %s1379_s15 = scalar_lea.vmem %s1128_s14, 768  ;;  %p1384_p6 = scmp.lt.s32.totalorder %s1128_s14, %s1128_s14 }
  0x44   :  { %388 = vrot.lane.b32.xlu1 %v1507_v5, %s1419_s23  ;;  %321 = vrot.lane.b32.xlu0 %v1510_v6, %s1418_s2  ;;  %v1547_v29 = vstv %s1141_s9  ;;  %v61_v34 = vmul.f32 %v1545_v27, %v57_v26  ;;  %v1557_v37 = vstv %s1142_s10  ;;  %v60_v3 = vmul.f32 %v1545_v27, %v56_v61  ;;  %p1380_p5 = scmp.ne.s32.totalorder %s1128_s14, %s1379_s15  ;;  %p1385_p7 = scmp.lt.s32.totalorder %s1379_s15, %s1379_s15 }
  0x45   :  { %v70_v35 = vmul.f32 %v1547_v29, %v66_v28  ;;  %v82_v42 = vmul.f32 %v1557_v37, %v78_v36  ;;  %v1565_v44 = vstv %s1143_s11  ;;  %v69_v4 = vmul.f32 %v1547_v29, %v65_v62 }
  0x46   :  { %v94_v50 = vmul.f32 %v1565_v44, %v90_v43  ;;  %p1386_p8 = por %p1385_p7, %p1384_p6 }
  0x47   :  { %v73_v41 = vadd.f32 %v70_v35, %v61_v34 }
  0x48   :  { %390 = vrot.lane.b32.xlu0 %v1311_v7, %s1419_s23  ;;  %180 = vrot.lane.b32.xlu1 %v1507_v5, %s1420_s24  ;;  %v77_v7 = vld [vmem:[#allocation7 + $0x30] sm:$0xff]  ;;  %p1387_p9 = pnand %p1386_p8, %p1380_p5 }
  0x49   :  { %v85_v49 = vadd.f32 %v82_v42, %v73_v41 }
  0x4b   :  { %v97_v55 = vadd.f32 %v94_v50, %v85_v49 }
  0x4c   :  { %182 = vrot.lane.b32.xlu0 %v1312_v8, %s1420_s24  ;;  %386 = vrot.lane.b32.xlu1 %v1510_v6, %s1419_s23 }
  0x4d   :  { %v1573_v60 = vpack.c.bf16 %v97_v55, %v97_v55  ;;  %v67_v55 = vld [vmem:[#allocation7 + $0x28] sm:$0xff] }
  0x50   :  { %452 = vrot.lane.b32.xlu1 %v1507_v5, %s1423_s25  ;;  %178 = vrot.lane.b32.xlu0 %v1510_v6, %s1420_s24 }
  0x54   :  { %244 = vrot.lane.b32.xlu1 %v1507_v5, %s1424_s26  ;;  %454 = vrot.lane.b32.xlu0 %v1313_v10, %s1423_s25 }
  0x58   :  { %450 = vrot.lane.b32.xlu1 %v1510_v6, %s1423_s25  ;;  %246 = vrot.lane.b32.xlu0 %v1314_v11, %s1424_s26  ;;  %v72_v11 = vadd.f32 %v69_v4, %v60_v3 }
  0x5c   :  { %354 = vrot.lane.b32.xlu1 %v1303_v13, %s1417_s22  ;;  %242 = vrot.lane.b32.xlu0 %v1510_v6, %s1424_s26 }
  0x60   :  { %148 = vrot.lane.b32.xlu1 %v1315_v14, %s1426_s27  ;;  %146 = vrot.lane.b32.xlu0 %v1496_v0, %s1426_s27  ;;  %v89_v14 = vld [vmem:[#allocation7 + $0x48] sm:$0xff] }
  0x64   :  { %212 = vrot.lane.b32.xlu1 %v1496_v0, %s1427_s28  ;;  %418 = vrot.lane.b32.xlu0 %v1303_v13, %s1416_s21 }
  0x68   :  { %482 = vrot.lane.b32.xlu1 %v1303_v13, %s1415_s18  ;;  %214 = vrot.lane.b32.xlu0 %v1316_v16, %s1427_s28 }
  0x6c   :  { %278 = vrot.lane.b32.xlu1 %v1317_v17, %s1428_s29  ;;  %276 = vrot.lane.b32.xlu0 %v1496_v0, %s1428_s29 }
  0x70   :  { %782 = vrot.lane.b32.xlu1 %v1507_v5, %s1429_s30  ;;  %144 = vrot.lane.b32.xlu0 %v1303_v13, %s1426_s27 }
  0x74   :  { %780 = vrot.lane.b32.xlu1 %v1510_v6, %s1429_s30  ;;  %784 = vrot.lane.b32.xlu0 %v1318_v18, %s1429_s30  ;;  %v93_v18 = vmul.f32 %v1565_v44, %v89_v14 }
  0x78   :  { %846 = vrot.lane.b32.xlu1 %v1507_v5, %s1430_s4  ;;  %210 = vrot.lane.b32.xlu0 %v1303_v13, %s1427_s28 }
  0x7c   :  { %844 = vrot.lane.b32.xlu1 %v1510_v6, %s1430_s4  ;;  %848 = vrot.lane.b32.xlu0 %v1319_v19, %s1430_s4 }
  0x80   :  { %910 = vrot.lane.b32.xlu1 %v1507_v5, %s1431_s0  ;;  %274 = vrot.lane.b32.xlu0 %v1303_v13, %s1428_s29 }
  0x84   :  { %908 = vrot.lane.b32.xlu1 %v1510_v6, %s1431_s0  ;;  %912 = vrot.lane.b32.xlu0 %v1320_v20, %s1431_s0 }
  0x88   :  { %816 = vrot.lane.b32.xlu1 %v1321_v21, %s1432_s5  ;;  %814 = vrot.lane.b32.xlu0 %v1496_v0, %s1432_s5 }
  0x8c   :  { %878 = vrot.lane.b32.xlu1 %v1496_v0, %s1433_s6  ;;  %812 = vrot.lane.b32.xlu0 %v1303_v13, %s1432_s5 }
  0x90   :  { %876 = vrot.lane.b32.xlu1 %v1303_v13, %s1433_s6  ;;  %880 = vrot.lane.b32.xlu0 %v1322_v22, %s1433_s6 }
  0x94   :  { %944 = vrot.lane.b32.xlu1 %v1323_v23, %s1434_s7  ;;  %942 = vrot.lane.b32.xlu0 %v1496_v0, %s1434_s7 }
  0x98   :  { %940 = vrot.lane.b32.xlu0 %v1303_v13, %s1434_s7  ;;  %v81_v13 = vmul.f32 %v1557_v37, %v77_v7 }
  0xa6   :  { %v1541_v24 = vpop.permute.xlu1 %420  ;;  %v1543_v25 = vpop.permute.xlu0 %356 }
  0xaa   :  { %v423_v30 = vpop.permute.xlu1 %422  ;;  %v359_v31 = vpop.permute.xlu0 %358 }
  0xab   :  { %v426_v32 = vsel %vm424_vm2, %v1541_v24, %v423_v30  ;;  %v362_v33 = vsel %vm360_vm3, %v1543_v25, %v359_v31 }
  0xac   :  { %432 = vst.msk [vmem:[#allocation2 + $0xc0] sm:$0xff] %vm159_vm4, %v426_v32  ;;  %368 = vst.msk [vmem:[#allocation2 + $0x98] sm:$0xff] %vm159_vm4, %v362_v33 }
  0xae   :  { %v487_v38 = vpop.permute.xlu1 %486  ;;  %v1559_v39 = vpop.permute.xlu0 %484 }
  0xaf   :  { %v490_v40 = vsel %vm488_vm5, %v1559_v39, %v487_v38 }
  0xb0   :  { %496 = vst.msk [vmem:[#allocation2 + $0xe8] sm:$0xff] %vm159_vm4, %v490_v40 }
  0xb2   :  { %v326_v45 = vpop.permute.xlu1 %325  ;;  %v324_v46 = vpop.permute.xlu0 %323 }
  0xb3   :  { %336 = vst.msk [vmem:[#allocation2 + $0x88] sm:$0xff] %vm124_vm1, %v326_v45  ;;  %v329_v47 = vsel %vm327_vm6, %v324_v46, %v326_v45  ;;  %v501_v48 = vld [vmem:[#allocation2 + $0x98] sm:$0xff]  ;;  %v506_v54 = vld [vmem:[#allocation2 + $0xc0] sm:$0xff] }
  0xb4   :  { %1220 = vmatpush3.bf16.msra.mxu0 %v501_v48  ;;  %516 = vmatprep.subr.bf16.mxu1 %v329_v47 }
  0xb5   :  { %1221 = vmatprep.subr.bf16.mxu0 %v1421_v9 }
  0xb6   :  { %v389_v51 = vpop.permute.xlu1 %388  ;;  %v322_v52 = vpop.permute.xlu0 %321 }
  0xb7   :  { %v328_v53 = vsel %vm327_vm6, %v322_v52, %v324_v46  ;;  %v511_v59 = vld [vmem:[#allocation2 + $0xe8] sm:$0xff]  ;;  %vm882_vm6 = vcmask 1006592  }
  0xb8   :  { %1222 = vmatpush3.bf16.msra.mxu0 %v506_v54  ;;  %517 = vmatpush1.bf16.msra.mxu1 %v328_v53  ;;  %v58_v54 = vld [vmem:[#allocation7 + $0x10] sm:$0xff] }
  0xb9   :  { %1223 = vmatprep.subr.bf16.mxu0 %v1421_v9  ;;  %v62_v62 = vmul.f32 %v1545_v27, %v58_v54 }
  0xba   :  { %v391_v56 = vpop.permute.xlu0 %390  ;;  %v181_v57 = vpop.permute.xlu1 %180 }
  0xbb   :  { %v394_v58 = vsel %vm392_vm7, %v389_v51, %v391_v56  ;;  %400 = vst.msk [vmem:[#allocation2 + $0xb0] sm:$0xff] %vm124_vm1, %v391_v56 }
  0xbc   :  { %1224 = vmatpush3.bf16.msra.mxu0 %v511_v59  ;;  %518 = vmatprep.subr.bf16.mxu1 %v394_v58 }
  0xbd   :  { %641 = vmatprep.subr.bf16.mxu0 %v1507_v5 }
  0xbe   :  { %v183_v63 = vpop.permute.xlu0 %182  ;;  %v387_v0 = vpop.permute.xlu1 %386 }
  0xbf   :  { %v186_v1 = vsel %vm184_vm8, %v181_v57, %v183_v63  ;;  %192 = vst.msk [vmem:[#allocation2 + $0x38] sm:$0xff] %vm124_vm1, %v183_v63  ;;  %v393_v2 = vsel %vm392_vm7, %v387_v0, %v389_v51  ;;  %1226 = vmatmul.mubr.msk.bf16.vlgmr.msra.gmra.mrb[0].mxu0 %vm512_vm9, %v1573_v60  ;;  %v71_v63 = vmul.f32 %v1547_v29, %v67_v55  ;;  %v79_v0 = vld [vmem:[#allocation7 + $0x40] sm:$0xff] }
  0xc0   :  { %642 = vmatpush1.bf16.msra.mxu0 %v1510_v6  ;;  %519 = vmatpush1.bf16.msra.mxu1 %v393_v2  ;;  %v84_v6 = vadd.f32 %v81_v13, %v72_v11  ;;  %v83_v29 = vmul.f32 %v1557_v37, %v79_v0 }
  0xc1   :  { %643 = vmatprep.subr.bf16.mxu0 %v186_v1  ;;  %673 = vmatprep.mubr.bf16.mxu0 %v1425_v12  ;;  %v74_v27 = vadd.f32 %v71_v63, %v62_v62 }
  0xc2   :  { %v453_v5 = vpop.permute.xlu1 %452  ;;  %v179_v8 = vpop.permute.xlu0 %178  ;;  %v96_v23 = vadd.f32 %v93_v18, %v84_v6 }
  0xc3   :  { %v185_v10 = vsel %vm184_vm8, %v179_v8, %v181_v57  ;;  %v86_v11 = vadd.f32 %v83_v29, %v74_v27 }
  0xc4   :  { %644 = vmatpush1.bf16.msra.mxu0 %v185_v10  ;;  %v1595_v32 = vpack.c.bf16 %v96_v23, %v96_v23 }
  0xc6   :  { %v245_v15 = vpop.permute.xlu1 %244  ;;  %v455_v16 = vpop.permute.xlu0 %454 }
  0xc7   :  { %v458_v17 = vsel %vm456_vm10, %v453_v5, %v455_v16  ;;  %464 = vst.msk [vmem:[#allocation2 + $0xd8] sm:$0xff] %vm124_vm1, %v455_v16 }
  0xc8   :  { %520 = vmatprep.subr.bf16.mxu1 %v458_v17 }
  0xca   :  { %v451_v19 = vpop.permute.xlu1 %450  ;;  %v247_v20 = vpop.permute.xlu0 %246 }
  0xcb   :  { %v457_v21 = vsel %vm456_vm10, %v451_v19, %v453_v5  ;;  %v250_v22 = vsel %vm248_vm11, %v245_v15, %v247_v20  ;;  %256 = vst.msk [vmem:[#allocation2 + $0x60] sm:$0xff] %vm124_vm1, %v247_v20 }
  0xcc   :  { %521 = vmatpush1.bf16.msra.mxu1 %v457_v21  ;;  %645 = vmatprep.subr.bf16.mxu0 %v250_v22 }
  0xce   :  { %v355_v26 = vpop.permute.xlu1 %354  ;;  %v243_v28 = vpop.permute.xlu0 %242 }
  0xcf   :  { %v361_v30 = vsel %vm360_vm3, %v355_v26, %v1543_v25  ;;  %366 = vst.msk [vmem:[#allocation2 + $0x88] sm:$0xff] %vm156_vm12, %v355_v26  ;;  %v249_v31 = vsel %vm248_vm11, %v243_v28, %v245_v15  ;;  %1180 = vmatmul.mubr.msk.bf16.vlgmr.msra.gmra.mrb[0].mxu1 %vm512_vm9, %v1573_v60  ;;  %vm914_vm3 = vcmask 736256  }
  0xd0   :  { %557 = vmatprep.subr.bf16.mxu1 %v361_v30  ;;  %646 = vmatpush1.bf16.msra.mxu0 %v249_v31 }
  0xd1   :  { %1229 = vmatprep.subr.bf16.mxu0 %v1421_v9  ;;  %589 = vmatprep.mubr.bf16.mxu1 %v1425_v12 }
  0xd2   :  { %v149_v33 = vpop.permute.xlu1 %148  ;;  %v147_v34 = vpop.permute.xlu0 %146 }
  0xd3   :  { %v152_v35 = vsel %vm124_vm1, %v147_v34, %v149_v33  ;;  %1183 = vmatmul.mubr.msk.bf16.vlgmr.msra.gmra.mrb[4].mxu0 %vm512_vm9, %v1595_v32 }
  0xd4   :  { %160 = vst.msk [vmem:[#allocation2 + $0x20] sm:$0xff] %vm159_vm4, %v152_v35  ;;  %1235 = vmatprep.mubr.msk.bf16.mxu0 %vm1422_vm0, %v1421_v9 }
  0xd6   :  { %v213_v25 = vpop.permute.xlu1 %212  ;;  %v419_v36 = vpop.permute.xlu0 %418  ;;  %v499_v38 = vld [vmem:[#allocation2 + $0x88] sm:$0xff] }
  0xd7   :  { %v425_v40 = vsel %vm424_vm2, %v419_v36, %v1541_v24  ;;  %430 = vst.msk [vmem:[#allocation2 + $0xb0] sm:$0xff] %vm156_vm12, %v419_v36  ;;  %558 = vmatpush1.bf16.msra.mxu1 %v499_v38  ;;  %vm850_vm2 = vcmask 744448  }
  0xd8   :  { %559 = vmatprep.subr.bf16.mxu1 %v425_v40 }
  0xda   :  { %v483_v41 = vpop.permute.xlu1 %482  ;;  %v215_v42 = vpop.permute.xlu0 %214 }
  0xdb   :  { %v489_v43 = vsel %vm488_vm5, %v483_v41, %v1559_v39  ;;  %494 = vst.msk [vmem:[#allocation2 + $0xd8] sm:$0xff] %vm156_vm12, %v483_v41  ;;  %v218_v45 = vsel %vm216_vm13, %v213_v25, %v215_v42  ;;  %v293_v46 = vld [vmem:[#allocation2 + $0x20] sm:$0xff]  ;;  %vm818_vm5 = vcmask 1014784  }
  0xdc   :  { %224 = vst.msk [vmem:[#allocation2 + $0x48] sm:$0xff] %vm159_vm4, %v218_v45  ;;  %1230 = vmatpush3.bf16.msra.mxu0 %v293_v46 }
  0xdd   :  { %1231 = vmatprep.subr.bf16.mxu0 %v1421_v9 }
  0xde   :  { %v279_v24 = vpop.permute.xlu1 %278  ;;  %v277_v47 = vpop.permute.xlu0 %276  ;;  %v504_v48 = vld [vmem:[#allocation2 + $0xb0] sm:$0xff] }
  0xdf   :  { %v282_v49 = vsel %vm280_vm14, %v277_v47, %v279_v24  ;;  %560 = vmatpush1.bf16.msra.mxu1 %v504_v48 }
  0xe0   :  { %288 = vst.msk [vmem:[#allocation2 + $0x70] sm:$0xff] %vm159_vm4, %v282_v49  ;;  %561 = vmatprep.subr.bf16.mxu1 %v489_v43 }
  0xe2   :  { %v783_v39 = vpop.permute.xlu1 %782  ;;  %v145_v50 = vpop.permute.xlu0 %144  ;;  %v509_v51 = vld [vmem:[#allocation2 + $0xd8] sm:$0xff] }
  0xe3   :  { %v151_v52 = vsel %vm124_vm1, %v145_v50, %v147_v34  ;;  %157 = vst.msk [vmem:[#allocation2 + $0x10] sm:$0xff] %vm156_vm12, %v145_v50  ;;  %v298_v53 = vld [vmem:[#allocation2 + $0x48] sm:$0xff]  ;;  %562 = vmatpush1.bf16.msra.mxu1 %v509_v51 }
  0xe4   :  { %1232 = vmatpush3.bf16.msra.mxu0 %v298_v53  ;;  %682 = vmatprep.subr.bf16.mxu1 %v151_v52 }
  0xe5   :  { %1233 = vmatprep.subr.bf16.mxu0 %v1421_v9 }
  0xe6   :  { %v781_v56 = vpop.permute.xlu1 %780  ;;  %v785_v57 = vpop.permute.xlu0 %784  ;;  %1181 = vmatmul.mubr.msk.bf16.vlgmr.msra.gmra.mrb[4].mxu1 %vm512_vm9, %v1573_v60  ;;  %v91_v60 = vld [vmem:[#allocation7 + $0x58] sm:$0xff] }
  0xe7   :  { %v787_v58 = vsel %vm786_vm15, %v781_v56, %v783_v39  ;;  %v788_v59 = vsel %vm786_vm15, %v783_v39, %v785_v57  ;;  %v303_v61 = vld [vmem:[#allocation2 + $0x70] sm:$0xff]  ;;  %714 = vmatprep.mubr.bf16.mxu1 %v1425_v12  ;;  %v95_v13 = vmul.f32 %v1565_v44, %v91_v60 }
  0xe8   :  { %1234 = vmatpush3.bf16.msra.mxu0 %v303_v61 }
  0xe9   :  { %973 = vmatprep.subr.bf16.mxu0 %v788_v59  ;;  %v98_v37 = vadd.f32 %v95_v13, %v86_v11 }
  0xea   :  { %v291_v1 = vld [vmem:[#allocation2 + $0x10] sm:$0xff]  ;;  %v847_v2 = vpop.permute.xlu1 %846  ;;  %v211_v3 = vpop.permute.xlu0 %210 }
  0xeb   :  { %794 = vst.msk [vmem:[#allocation2 + $0x10] sm:$0xff] %vm124_vm1, %v785_v57  ;;  %v217_v4 = vsel %vm216_vm13, %v211_v3, %v213_v25  ;;  %683 = vmatpush1.bf16.msra.mxu1 %v291_v1  ;;  %1236 = vmatmul.mubr.msk.bf16.vlgmr.msra.gmra.mrb[0].mxu0 %vm512_vm9, %v1595_v32  ;;  %v101_v44 = vpack.c.bf16 %v98_v37, %v98_v37 }
  0xec   :  { %222 = vst.msk [vmem:[#allocation2 + $0x38] sm:$0xff] %vm156_vm12, %v211_v3  ;;  %974 = vmatpush1.bf16.msra.mxu0 %v787_v58  ;;  %684 = vmatprep.subr.bf16.mxu1 %v217_v4 }
  0xed   :  { %1005 = vmatprep.mubr.bf16.mxu0 %v1425_v12 }
  0xee   :  { %v845_v7 = vpop.permute.xlu1 %844  ;;  %v849_v5 = vpop.permute.xlu0 %848 }
  0xef   :  { %v851_v8 = vsel %vm850_vm2, %v845_v7, %v847_v2  ;;  %v852_v10 = vsel %vm850_vm2, %v847_v2, %v849_v5 }
  0xf0   :  { %975 = vmatprep.subr.bf16.mxu0 %v852_v10 }
  0xf1   :  { %976 = vmatpush1.bf16.msra.mxu0 %v851_v8 }
  0xf2   :  { %v911_v15 = vpop.permute.xlu1 %910  ;;  %v275_v16 = vpop.permute.xlu0 %274 }
  0xf3   :  { %v296_v14 = vld [vmem:[#allocation2 + $0x38] sm:$0xff]  ;;  %v281_v17 = vsel %vm280_vm14, %v275_v16, %v277_v47  ;;  %286 = vst.msk [vmem:[#allocation2 + $0x60] sm:$0xff] %vm156_vm12, %v275_v16 }
  0xf4   :  { %858 = vst.msk [vmem:[#allocation2 + $0x38] sm:$0xff] %vm124_vm1, %v849_v5  ;;  %685 = vmatpush1.bf16.msra.mxu1 %v296_v14 }
  0xf5   :  { %686 = vmatprep.subr.bf16.mxu1 %v281_v17 }
  0xf6   :  { %v909_v6 = vpop.permute.xlu1 %908  ;;  %v913_v18 = vpop.permute.xlu0 %912 }
  0xf7   :  { %v915_v19 = vsel %vm914_vm3, %v909_v6, %v911_v15  ;;  %v916_v20 = vsel %vm914_vm3, %v911_v15, %v913_v18 }
  0xf8   :  { %977 = vmatprep.subr.bf16.mxu0 %v916_v20 }
  0xf9   :  { %978 = vmatpush1.bf16.msra.mxu0 %v915_v19 }
  0xfa   :  { %v301_v21 = vld [vmem:[#allocation2 + $0x60] sm:$0xff]  ;;  %v817_v22 = vpop.permute.xlu1 %816  ;;  %v815_v23 = vpop.permute.xlu0 %814  ;;  %1239 = vmatprep.subr.bf16.mxu0 %v1421_v9 }
  0xfb   :  { %922 = vst.msk [vmem:[#allocation2 + $0x60] sm:$0xff] %vm124_vm1, %v913_v18  ;;  %v820_v26 = vsel %vm818_vm5, %v815_v23, %v817_v22  ;;  %687 = vmatpush1.bf16.msra.mxu1 %v301_v21 }
  0xfc   :  { %826 = vst.msk [vmem:[#allocation2 + $0x20] sm:$0xff] %vm159_vm4, %v817_v22  ;;  %1204 = vmatmul.mubr.msk.bf16.vlgmr.msra.gmra.mrb[4].mxu0 %vm512_vm9, %v101_v44  ;;  %1014 = vmatprep.subr.bf16.mxu1 %v820_v26 }
  0xfd   :  { %1245 = vmatprep.mubr.msk.bf16.mxu0 %vm1422_vm0, %v1421_v9  ;;  %vm946_vm0 = vcmask 998400  }
  0xfe   :  { %v879_v28 = vpop.permute.xlu1 %878  ;;  %v813_v30 = vpop.permute.xlu0 %812  ;;  %1184 = vmatmul.mubr.msk.bf16.vlgmr.msra.gmra.mrb[4].mxu1 %vm512_vm9, %v1595_v32 }
  0xff   :  { %v819_v31 = vsel %vm818_vm5, %v813_v30, %v815_v23  ;;  %1046 = vmatprep.mubr.bf16.mxu1 %v1425_v12 }
 0x100   :  { %824 = vst.msk [vmem:[#allocation2 + $0x10] sm:$0xff] %vm156_vm12, %v819_v31 }
 0x102   :  { %v877_v33 = vpop.permute.xlu1 %876  ;;  %v881_v34 = vpop.permute.xlu0 %880 }
 0x103   :  { %v959_v35 = vld [vmem:[#allocation2 + $0x20] sm:$0xff]  ;;  %v883_v25 = vsel %vm882_vm6, %v877_v33, %v879_v28  ;;  %v884_v36 = vsel %vm882_vm6, %v879_v28, %v881_v34  ;;  %890 = vst.msk [vmem:[#allocation2 + $0x48] sm:$0xff] %vm159_vm4, %v881_v34 }
 0x104   :  { %1240 = vmatpush3.bf16.msra.mxu0 %v959_v35  ;;  %888 = vst.msk [vmem:[#allocation2 + $0x38] sm:$0xff] %vm156_vm12, %v883_v25 }
 0x105   :  { %1241 = vmatprep.subr.bf16.mxu0 %v1421_v9 }
 0x106   :  { %v945_v32 = vpop.permute.xlu1 %944  ;;  %v943_v38 = vpop.permute.xlu0 %942 }
 0x107   :  { %954 = vst.msk [vmem:[#allocation2 + $0x70] sm:$0xff] %vm159_vm4, %v945_v32  ;;  %v948_v12 = vsel %vm946_vm0, %v943_v38, %v945_v32  ;;  %v957_v40 = vld [vmem:[#allocation2 + $0x10] sm:$0xff]  ;;  %vm1112_vm4 = vcmask 785408  }
 0x108   :  { %1015 = vmatpush1.bf16.msra.mxu1 %v957_v40 }
 0x109   :  { %1016 = vmatprep.subr.bf16.mxu1 %v884_v36 }
 0x10a   :  { %v941_v41 = vpop.permute.xlu0 %940  ;;  %v964_v42 = vld [vmem:[#allocation2 + $0x48] sm:$0xff] }
 0x10b   :  { %v947_v43 = vsel %vm946_vm0, %v941_v41, %v943_v38  ;;  %1242 = vmatpush3.bf16.msra.mxu0 %v964_v42  ;;  %v962_v45 = vld [vmem:[#allocation2 + $0x38] sm:$0xff] }
 0x10c   :  { %952 = vst.msk [vmem:[#allocation2 + $0x60] sm:$0xff] %vm156_vm12, %v947_v43  ;;  %1017 = vmatpush1.bf16.msra.mxu1 %v962_v45  ;;  %1243 = vmatprep.subr.bf16.mxu0 %v1421_v9 }
 0x10d   :  { %1018 = vmatprep.subr.bf16.mxu1 %v948_v12 }
 0x10e   :  { %v969_v46 = vld [vmem:[#allocation2 + $0x70] sm:$0xff] }
 0x10f   :  { %1244 = vmatpush3.bf16.msra.mxu0 %v969_v46 }
 0x112   :  { %1246 = vmatmul.mubr.msk.bf16.vlgmr.msra.gmra.mrb[0].mxu0 %vm512_vm9, %v101_v44 }
 0x113   :  { %v967_v24 = vld [vmem:[#allocation2 + $0x60] sm:$0xff] }
 0x114   :  { %1019 = vmatpush1.bf16.msra.mxu1 %v967_v24 }
 0x117   :  { %1205 = vmatmul.mubr.msk.bf16.vlgmr.msra.gmra.mrb[4].mxu1 %vm512_vm9, %v101_v44 }
 0x1a2   :  { %v550_v47 = vpop.f32.mrb[0].mxu1 }
 0x1a3   :  { %v552_v48 = vpop.f32.mrb[1].mxu1 }
 0x1a4   :  { %v554_v49 = vpop.f32.mrb[2].mxu1 }
 0x1a5   :  { %v555_v39 = vpop.f32.mrb[3].mxu1 }
 0x1cf   :  { %v1007_v50 = vpop.f32.mrb[4].mxu0 }
 0x1d0   :  { %v1249_v51 = vadd.f32 %v1007_v50, %v550_v47  ;;  %v1009_v52 = vpop.f32.mrb[5].mxu0 }
 0x1d1   :  { %v1250_v53 = vadd.f32 %v1009_v52, %v552_v48  ;;  %v1011_v54 = vpop.f32.mrb[6].mxu0 }
 0x1d2   :  { %1100 = vst [vmem:[#allocation10] sm:$0xff] %v1249_v51  ;;  %v1012_v9 = vpop.f32.mrb[7].mxu0 }
 0x1d3   :  { %1101 = vst [vmem:[#allocation10 + $0x8] sm:$0xff] %v1250_v53 }
 0x1e5   :  { %v1089_v55 = vpop.f32.mrb[0].mxu0 }
 0x1e6   :  { %v1247_v56 = vpop.f32.mrb[1].mxu0 }
 0x1e7   :  { %v1092_v57 = vpop.f32.mrb[2].mxu0 }
 0x1e8   :  { %v1248_v58 = vpop.f32.mrb[3].mxu0 }
 0x1ea   :  { %v1048_v59 = vpop.f32.mrb[4].mxu1 }
 0x1eb   :  { %1102 = vst.msk [vmem:[#allocation10 + $0x10] sm:$0xff] %vm124_vm1, %v1048_v59  ;;  %1106 = vrot.lane.b32.xlu1 %v1048_v59, %s1435_s12  ;;  %v1050_v61 = vpop.f32.mrb[5].mxu1 }
 0x1ec   :  { %1108 = vrot.lane.b32.xlu0 %v1050_v61, %s1435_s12  ;;  %v1052_v62 = vpop.f32.mrb[6].mxu1 }
 0x1ed   :  { %v1053_v63 = vpop.f32.mrb[7].mxu1 }
 0x1ef   :  { %1110 = vrot.lane.b32.xlu1 %v1089_v55, %s1435_s12 }
 0x25d   :  { %v1107_v0 = vpop.permute.xlu1 %1106 }
 0x25e   :  { %v1109_v1 = vpop.permute.xlu0 %1108 }
 0x25f   :  { %v1113_v2 = vsel %vm1112_vm4, %v1107_v0, %v1109_v1 }
 0x260   :  { %1119 = vst [vmem:[#allocation10 + $0x18] sm:$0xff] %v1113_v2 }
 0x261   :  { %v1111_v3 = vpop.permute.xlu1 %1110 }
 0x262   :  { %v1114_v4 = vsel %vm1112_vm4, %v1109_v1, %v1111_v3  ;;  %1121 = vst.msk [vmem:[#allocation10 + $0x28] sm:$0xff] %vm124_vm1, %v1111_v3 }
 0x263   :  { %1120 = vst [vmem:[#allocation10 + $0x20] sm:$0xff] %v1114_v4 }
 0x264   :  { %1390 = shalt.err (!%p1387_p9)
}
 0x265   :  { %s1391_s1 = scalar_lea.hbm %s1672_s3, 768 }
 0x266   :  { %p1392_p10 = scmp.ne.s32.totalorder %s1672_s3, %s1391_s1  ;;  %p1395_p11 = scmp.lt.u32.totalorder %s1391_s1, %s1672_s3 }
 0x268   :  { %p1397_p12 = pnand %p1395_p11, %p1392_p10 }
 0x26a   :  { %1400 = shalt.err (!%p1397_p12)
}
 0x26b   :  { %s1437_s22 = smov 384   ;;  %s1438_s2 = smov 24  }
 0x26c   :  { %1133 = dma.vmem_to_hbm [thread:$0]  %s1128_s14, 768, %s1672_s3, [#allocation5], %s1437_s22, %s1437_s22, %s1438_s2  }
 0x26d   :  { %1407 = dma.done.wait [#allocation5], 768  }
 0x26e   :  { %1408 = vsyncadd [#allocation5], 4294966528 }
 0x26f   :  { %1137 = vsyncpa [#allocation4], 1 }
 0x270   :  { %1138 = vsyncpa [#allocation9], 1 }
 0x271   :  { %1139 = vsyncpa [#allocation5], 1 }
 0x272   :  { %1140 = vsyncpa [#allocation6], 1 }

</bundles_post_ra>
